<compile_context>
chip_gen: v5e
topology: v5e:2x2
jax: 0.10.0
libtpu: 0.0.40
codegen_flags: <defaults>
</compile_context>

<pallas_src>
import jax
import jax.numpy as jnp
from jax.experimental import pallas as pl
from jax.experimental.pallas import tpu as pltpu


def _confusion_matrix_kernel(w_ref, out_ref):
    # w_ref / out_ref: (K, TN) column tile; full row extent per block so the
    # dim=0 (row) L1 reduction stays local to the block.
    j = pl.program_id(0)
    K, TN = w_ref.shape

    sig = jax.nn.sigmoid(w_ref[...])                                   # EUP exp

    # Synthesize I + sig*co without loading co/eye: diagonal -> 1.0, else sig.
    row_ids = jax.lax.broadcasted_iota(jnp.int32, (K, TN), 0)
    col_ids = jax.lax.broadcasted_iota(jnp.int32, (K, TN), 1) + j * TN
    # Store the unnormalized matrix directly into out_ref (no extra live tile).
    out_ref[...] = jnp.where(row_ids == col_ids, jnp.float32(1.0), sig)

    # F.normalize(A, p=1, dim=0): per-column L1 over rows. All entries >= 0 so
    # no abs needed; the 1e-12 clamp is kept for strict PyTorch fidelity
    # (col_l1 >= 1 by construction for real columns).
    col_l1 = jnp.sum(out_ref[...], axis=0, keepdims=True)              # (1, TN)
    denom = jnp.maximum(col_l1, jnp.float32(1e-12))
    out_ref[...] = out_ref[...] * pl.reciprocal(denom, approx=False)


def _vmem_block_budget_bytes():
    """Byte budget for all live per-block buffers (2 in + 2 out pipeline
    buffers + compiler temporaries), derived from the chip's physical VMEM.
    Conservative fallback assumes the smallest generation (v7x: 64 MiB/TC)."""
    try:
        cap = int(pltpu.get_tpu_info().vmem_capacity_bytes)
    except Exception:
        cap = 64 << 20
    return int(max(16 << 20, min(48 << 20, int(cap * 0.4))))


def _pick_tn(K, Kp):
    """Largest lane-dense column tile (multiple of 128, divides Kp) whose
    full-row (K, tn) f32 block footprint stays under the VMEM budget."""
    budget = _vmem_block_budget_bytes()
    per_lane_bytes = 5 * K * 4        # ~5 live (K, tn) f32 buffers per block
    tn = (budget // per_lane_bytes) // 128 * 128
    tn = int(max(128, min(tn, 1024, Kp)))
    # Keep grid length >= 2 when possible so v7x's 2 TensorCores both get work
    # (no-op/harmless on single-core v5e/v6e).
    if Kp >= 256:
        half = max(128, (Kp // 2) // 128 * 128)
        tn = min(tn, half)
    while Kp % tn:                    # Kp is a multiple of 128, so tn=128 always works
        tn -= 128
    return tn


def confusion_matrix_forward(w):
    K = w.shape[0]
    assert w.shape == (K, K)
    w = w.astype(jnp.float32)

    # Pad columns to a multiple of 128 so every tile is lane-dense; padded
    # columns never contain a diagonal entry and are sliced off afterwards.
    Kp = ((K + 127) // 128) * 128
    w_p = w if Kp == K else jnp.pad(w, ((0, 0), (0, Kp - K)))

    tn = _pick_tn(K, Kp)
    grid = (Kp // tn,)
    block_bytes = K * tn * 4
    vmem_limit = int(min(48 << 20, max(16 << 20, 6 * block_bytes)))

    col_spec = pl.BlockSpec((K, tn), lambda j: (0, j))
    out = pl.pallas_call(
        _confusion_matrix_kernel,
        out_shape=jax.ShapeDtypeStruct((K, Kp), jnp.float32),
        grid=grid,
        in_specs=[col_spec],
        out_specs=col_spec,
        compiler_params=pltpu.CompilerParams(
            dimension_semantics=("parallel",),
            vmem_limit_bytes=vmem_limit,
        ),
    )(w_p)
    return out if Kp == K else out[:, :K]


def make_w(K, init=2.0):
    # Deterministic parameter init, mirroring the PyTorch __init__.
    return -init * jnp.ones((K, K), dtype=jnp.float32)


def _reference(w):
    K = w.shape[0]
    eye = jnp.eye(K, dtype=jnp.float32)
    co = jnp.ones((K, K), dtype=jnp.float32) - eye
    a = eye + jax.nn.sigmoid(w) * co
    return a / jnp.maximum(jnp.sum(jnp.abs(a), axis=0, keepdims=True), 1e-12)


if __name__ == "__main__":
    key = jax.random.PRNGKey(0)

    # Module-consistent tiny case (K=16): single padded lane-dense block.
    K = 16
    w = make_w(K, init=2.0)
    A = jax.block_until_ready(confusion_matrix_forward(w))
    assert A.shape == (K, K) and A.dtype == jnp.float32
    assert jnp.allclose(A, _reference(w), atol=1e-6), "mismatch vs reference (K=16)"

    # Tiled, multi-step grid path with a random (non-constant) w.
    K2 = 256
    w2 = jax.random.normal(key, (K2, K2), dtype=jnp.float32)
    A2 = jax.block_until_ready(confusion_matrix_forward(w2))
    assert jnp.allclose(A2, _reference(w2), atol=1e-6), "mismatch vs reference (K=256)"

    # Non-multiple-of-128 path exercising the column-padding fallback.
    K3 = 200
    w3 = make_w(K3, init=2.0)
    A3 = jax.block_until_ready(confusion_matrix_forward(w3))
    assert A3.shape == (K3, K3)
    assert jnp.allclose(A3, _reference(w3), atol=1e-6), "mismatch vs reference (K=200)"

    print("KERNEL_OK")
</pallas_src>

<mosaic_0001>
module attributes {stable_mosaic.version = 11 : i64} {
  func.func @_confusion_matrix_kernel(%arg0: i32, %arg1: memref<16x128xf32, #tpu.memory_space<vmem>>, %arg2: memref<16x128xf32, #tpu.memory_space<vmem>>) attributes {dimension_semantics = [#tpu.dimension_semantics<parallel>], iteration_bounds = array<i64: 1>, scalar_prefetch = 0 : i64, scratch_operands = 0 : i64, tpu.core_type = #tpu.core_type<tc>, window_params = [{transform_indices = @transform_0, window_bounds = array<i64: 16, 128>}, {transform_indices = @transform_1, window_bounds = array<i64: 16, 128>}]} {
    %c0 = arith.constant 0 : index
    %c0_0 = arith.constant 0 : index
    %0 = vector.load %arg1[%c0, %c0_0] : memref<16x128xf32, #tpu.memory_space<vmem>>, vector<16x128xf32>
    %1 = arith.negf %0 : vector<16x128xf32>
    %2 = math.exp %1 : vector<16x128xf32>
    %cst = arith.constant 1.000000e+00 : f32
    %3 = vector.broadcast %cst : f32 to vector<16x128xf32>
    %4 = arith.addf %3, %2 : vector<16x128xf32>
    %5 = arith.divf %3, %4 : vector<16x128xf32>
    %6 = tpu.iota {dimensions = array<i32: 0>} : vector<16x128xi32>
    %7 = tpu.iota {dimensions = array<i32: 1>} : vector<16x128xi32>
    %c128_i32 = arith.constant 128 : i32
    %8 = arith.muli %arg0, %c128_i32 : i32
    %9 = vector.broadcast %8 : i32 to vector<16x128xi32>
    %10 = arith.addi %7, %9 : vector<16x128xi32>
    %11 = arith.cmpi eq, %6, %10 : vector<16x128xi32>
    %cst_1 = arith.constant 1.000000e+00 : f32
    %12 = vector.broadcast %cst_1 : f32 to vector<16x128xf32>
    %13 = arith.select %11, %12, %5 : vector<16x128xi1>, vector<16x128xf32>
    %c0_2 = arith.constant 0 : index
    %c0_3 = arith.constant 0 : index
    %14 = vector.load %arg2[%c0_2, %c0_3] : memref<16x128xf32, #tpu.memory_space<vmem>>, vector<16x128xf32>
    tpu.vector_store %arg2[%c0_2, %c0_3], %13 {strides = array<i32>} : memref<16x128xf32, #tpu.memory_space<vmem>>, vector<16x128xf32>,
    %c0_4 = arith.constant 0 : index
    %c0_5 = arith.constant 0 : index
    %15 = vector.load %arg2[%c0_4, %c0_5] : memref<16x128xf32, #tpu.memory_space<vmem>>, vector<16x128xf32>
    %cst_6 = arith.constant dense<0.000000e+00> : vector<128xf32>
    %16 = vector.multi_reduction <add>, %15, %cst_6 [0] : vector<16x128xf32> to vector<128xf32>
    %17 = vector.shape_cast %16 : vector<128xf32> to vector<1x128xf32>
    %cst_7 = arith.constant 9.99999996E-13 : f32
    %18 = vector.broadcast %cst_7 : f32 to vector<1x128xf32>
    %19 = arith.maximumf %17, %18 : vector<1x128xf32>
    %c0_8 = arith.constant 0 : index
    %c0_9 = arith.constant 0 : index
    %20 = vector.load %arg2[%c0_8, %c0_9] : memref<16x128xf32, #tpu.memory_space<vmem>>, vector<16x128xf32>
    %21 = tpu.reciprocal %19 : vector<1x128xf32> -> vector<1x128xf32>
    %22 = vector.broadcast %21 : vector<1x128xf32> to vector<16x128xf32>
    %23 = arith.mulf %20, %22 : vector<16x128xf32>
    %c0_10 = arith.constant 0 : index
    %c0_11 = arith.constant 0 : index
    %24 = vector.load %arg2[%c0_10, %c0_11] : memref<16x128xf32, #tpu.memory_space<vmem>>, vector<16x128xf32>
    tpu.vector_store %arg2[%c0_10, %c0_11], %23 {strides = array<i32>} : memref<16x128xf32, #tpu.memory_space<vmem>>, vector<16x128xf32>,
    return
  }
  func.func @transform_0(%arg0: i32) -> (i32, i32) {
    %c0_i32 = arith.constant 0 : i32
    %c0_i32_0 = arith.constant 0 : i32
    return %c0_i32, %arg0 : i32, i32
  }
  func.func @transform_1(%arg0: i32) -> (i32, i32) {
    %c0_i32 = arith.constant 0 : i32
    %c0_i32_0 = arith.constant 0 : i32
    return %c0_i32, %arg0 : i32, i32
  }
}

</mosaic_0001>

<bundles_post_ra>
// kernel: tpu_custom_call.1
= control target key start
LH: loop header
LB: loop body
LE: loop exit
PB: predicated region body
PF: predicated region fallthrough
CT: control target
= control target key end

     0   :  { %6 = vsyncpa [#allocation3], 0  ;;  %s220_s0 = inlined_call_operand.hbm [shape: f32[16,128], index: 0, kind: input, shape index: {}]   ;;  %s221_s1 = inlined_call_operand.hbm [shape: f32[16,128], index: 1, kind: output, shape index: {}]  }
   0x1   :  { %7 = vsyncpa [#allocation4], 0  ;;  %s12_s8 = sshll.u32 %s220_s0, 4  ;;  %s194_s9 = smov [#allocation2]   ;;  %s13_s8 = int_to_ptr.hbm [resolvable:$true] %s12_s8 }
   0x2   :  { %s14_s10 = sshll.u32 %s194_s9, 4  ;;  %s195_s11 = smov 128   ;;  %s15_s10 = int_to_ptr.vmem [resolvable:$true] %s14_s10 }
   0x3   :  { %s196_s12 = smov 8  }
   0x4   :  { %20 = dma.hbm_to_vmem [thread:$0]  %s13_s8, 256, %s15_s10, [#allocation3], %s195_s11, %s195_s11, %s196_s12  }
   0x5   :  { %190 = dma.done.wait [#allocation3], 256  }
   0x6   :  { %191 = vsyncadd [#allocation3], 4294967040  ;;  %v25_v0 = vld [vmem:[#allocation2] sm:$0xff]  ;;  %v26_v1 = vld [vmem:[#allocation2 + $0x8] sm:$0xff]  ;;  %v65_v8 = vlaneseq  ;;  %s197_s0 = smov [#allocation5]   ;;  %s113_s16 = sshll.u32 %s221_s1, 4  ;;  %s114_s16 = int_to_ptr.hbm [resolvable:$true] %s113_s16 }
   0x7   :  { %v126_v2 = vmul.f32 -1.442695, %v25_v0  ;;  %v127_v3 = vmul.f32 -1.442695, %v26_v1  ;;  %s111_s13 = sshll.u32 %s197_s0, 4  ;;  %s112_s13 = int_to_ptr.vmem [resolvable:$true] %s111_s13 }
   0x8   :  { %v66_v12 = vshrl.u32 %v65_v8, 7  ;;  %v69_v14 = vand.u32 127, %v65_v8 }
   0x9   :  { %132 = vpow2.f32 %v126_v2 }
   0xa   :  { %134 = vpow2.f32 %v127_v3  ;;  %v67_v22 = vadd.s32 8, %v66_v12  ;;  %vm73_vm7 = vcmp.eq.s32.totalorder %v66_v12, %v69_v14 }
   0xc   :  { %vm74_vm9 = vcmp.eq.s32.totalorder %v67_v22, %v69_v14 }
   0xf   :  { %v133_v4 = vpop.eup %132 }
  0x10   :  { %v135_v5 = vpop.eup %134  ;;  %v33_v6 = vadd.f32 1.0, %v133_v4 }
  0x11   :  { %v34_v7 = vadd.f32 1.0, %v135_v5 }
  0x12   :  { %136 = vrcp.f32 %v33_v6  ;;  %vm40_vm0 = vweird.f32 %v33_v6  ;;  %v46_v13 = vand.u32 2147483648, %v33_v6  ;;  %v44_v17 = vand.u32 2147483647, %v33_v6 }
  0x13   :  { %138 = vrcp.f32 %v34_v7  ;;  %v61_v18 = vand.u32 2147483648, %v34_v7  ;;  %vm55_vm2 = vweird.f32 %v34_v7  ;;  %v59_v20 = vand.u32 2147483647, %v34_v7 }
  0x14   :  { %v47_v23 = vor.u32 1.1754944e-38, %v46_v13  ;;  %vm45_vm5 = vcmp.eq.f32.partialorder %v44_v17, 8.507059e+37 }
  0x15   :  { %v62_v26 = vor.u32 1.1754944e-38, %v61_v18  ;;  %vm60_vm8 = vcmp.eq.f32.partialorder %v59_v20, 8.507059e+37 }
  0x18   :  { %v137_v9 = vpop.eup %136 }
  0x19   :  { %v139_v10 = vpop.eup %138  ;;  %v36_v11 = vmul.f32 %v137_v9, %v33_v6  ;;  %vm41_vm1 = vweird.f32 %v137_v9 }
  0x1a   :  { %v51_v15 = vmul.f32 %v139_v10, %v34_v7  ;;  %vm56_vm3 = vweird.f32 %v139_v10  ;;  %vm42_vm4 = vmor %vm40_vm0, %vm41_vm1 }
  0x1b   :  { %v37_v16 = vsub.f32 1.0, %v36_v11  ;;  %vm57_vm6 = vmor %vm55_vm2, %vm56_vm3 }
  0x1c   :  { %v52_v19 = vsub.f32 1.0, %v51_v15 }
  0x1d   :  { %v38_v21 = vmul.f32 %v137_v9, %v37_v16 }
  0x1e   :  { %v53_v24 = vmul.f32 %v139_v10, %v52_v19 }
  0x1f   :  { %v39_v25 = vadd.f32 %v137_v9, %v38_v21 }
  0x20   :  { %v54_v27 = vadd.f32 %v139_v10, %v53_v24 }
  0x21   :  { %v43_v28 = vsel %vm42_vm4, %v137_v9, %v39_v25 }
  0x22   :  { %v48_v29 = vsel %vm45_vm5, %v47_v23, %v43_v28  ;;  %v58_v30 = vsel %vm57_vm6, %v139_v10, %v54_v27 }
  0x23   :  { %v75_v31 = vsel %vm73_vm7, 1.0, %v48_v29  ;;  %v63_v32 = vsel %vm60_vm8, %v62_v26, %v58_v30 }
  0x24   :  { %v76_v33 = vsel %vm74_vm9, 1.0, %v63_v32 }
  0x25   :  { %v81_v34 = vadd.f32 %v76_v33, %v75_v31 }
  0x27   :  { %v82_v35 = vrot.slane %v81_v34, 4 }
  0x29   :  { %v83_v36 = vadd.f32 %v82_v35, %v81_v34 }
  0x2b   :  { %v84_v37 = vrot.slane %v83_v36, 2 }
  0x2d   :  { %v85_v38 = vadd.f32 %v84_v37, %v83_v36 }
  0x2f   :  { %v86_v39 = vrot.slane %v85_v38, 1 }
  0x31   :  { %v87_v40 = vadd.f32 %v86_v39, %v85_v38 }
  0x33   :  { %v88_v41 = vmax.f32 %v87_v40, 1e-12 }
  0x35   :  { %140 = vrcp.f32 %v88_v41  ;;  %v100_v44 = vand.u32 2147483648, %v88_v41  ;;  %vm94_vm10 = vweird.f32 %v88_v41  ;;  %v98_v46 = vand.u32 2147483647, %v88_v41 }
  0x37   :  { %v101_v48 = vor.u32 1.1754944e-38, %v100_v44  ;;  %vm99_vm13 = vcmp.eq.f32.partialorder %v98_v46, 8.507059e+37 }
  0x3b   :  { %v141_v42 = vpop.eup %140 }
  0x3c   :  { %v90_v43 = vmul.f32 %v141_v42, %v88_v41  ;;  %vm95_vm11 = vweird.f32 %v141_v42 }
  0x3d   :  { %vm96_vm12 = vmor %vm94_vm10, %vm95_vm11 }
  0x3e   :  { %v91_v45 = vsub.f32 1.0, %v90_v43 }
  0x40   :  { %v92_v47 = vmul.f32 %v141_v42, %v91_v45 }
  0x42   :  { %v93_v49 = vadd.f32 %v141_v42, %v92_v47 }
  0x44   :  { %v97_v50 = vsel %vm96_vm12, %v141_v42, %v93_v49 }
  0x45   :  { %v102_v51 = vsel %vm99_vm13, %v101_v48, %v97_v50 }
  0x46   :  { %v103_v52 = vmul.f32 %v102_v51, %v75_v31  ;;  %v104_v53 = vmul.f32 %v102_v51, %v76_v33 }
  0x48   :  { %105 = vst [vmem:[#allocation5] sm:$0xff] %v103_v52 }
  0x49   :  { %106 = vst [vmem:[#allocation5 + $0x8] sm:$0xff] %v104_v53 }
  0x4a   :  { %119 = dma.vmem_to_hbm [thread:$0]  %s112_s13, 256, %s114_s16, [#allocation4], %s195_s11, %s195_s11, %s196_s12  }
  0x4b   :  { %192 = dma.done.wait [#allocation4], 256  }
  0x4c   :  { %193 = vsyncadd [#allocation4], 4294967040 }
  0x4d   :  { %124 = vsyncpa [#allocation3], 1 }
  0x4e   :  { %125 = vsyncpa [#allocation4], 1 }

</bundles_post_ra>
